<compile_context>
chip_gen: v5e
topology: v5e:2x2
jax: 0.10.0
libtpu: 0.0.40
codegen_flags: <defaults>
</compile_context>

<pallas_src>
import functools

import jax
import jax.numpy as jnp
from jax.experimental import pallas as pl
from jax.experimental.pallas import tpu as pltpu

# ---- problem sizes (small, TPU-tile friendly) -------------------------------
B = 8          # batch
D_IN = 32      # input features (multiple of 8 -> clean sublane tiling)
D_OUT = 128    # output features per subnetwork (lane-aligned)
N_SUB = 3      # number of subnetworks
N_TOTAL = N_SUB * D_OUT


def _fused_kernel(x_ref, p_ref, o_ref, *, d_in):
    """o = relu(x @ W_all + b_all).

    p_ref packs the fused parameters: rows [0, d_in) are W_all
    (D_IN, N_TOTAL), row d_in is the bias, remaining rows are zero padding.
    """
    w = p_ref[:d_in, :]                 # (D_IN, N_TOTAL), sublane-aligned slice
    b = p_ref[d_in:d_in + 1, :]         # (1, N_TOTAL)
    y = jnp.dot(x_ref[...], w, preferred_element_type=jnp.float32)
    o_ref[...] = jnp.maximum(y + b, 0.0).astype(o_ref.dtype)


def make_multimodular_forward(weights, biases):
    """Pre-fuses the per-subnetwork Linear params once (outside the hot path).

    weights: (N_SUB, D_IN, D_OUT), biases: (N_SUB, D_OUT).
    Returns forward(x): (B, D_IN) -> (B, N_SUB * D_OUT)
    == concat of per-subnetwork relu(x @ W[s] + b[s]) along dim=1.
    """
    n_sub, d_in, d_out = weights.shape
    n_total = n_sub * d_out
    # Weight rows + 1 bias row, padded to a multiple of 8 sublanes.
    rows = ((d_in + 1 + 7) // 8) * 8

    # Column block s of w_all equals weights[s]; bias matches that column order.
    w_all = jnp.transpose(weights, (1, 0, 2)).reshape(d_in, n_total)
    b_all = biases.reshape(1, n_total)
    params = jnp.zeros((rows, n_total), jnp.float32)
    params = params.at[:d_in, :].set(w_all)
    params = params.at[d_in:d_in + 1, :].set(b_all)
    params = jax.block_until_ready(jax.device_put(params))  # materialize once

    kernel = functools.partial(_fused_kernel, d_in=d_in)

    def _forward(x, params):
        b_sz = x.shape[0]
        cost = pl.CostEstimate(
            flops=2 * b_sz * d_in * n_total + 2 * b_sz * n_total,
            transcendentals=0,
            bytes_accessed=4 * (b_sz * d_in + rows * n_total + b_sz * n_total),
        )
        # Single invocation, no grid: whole arrays live in VMEM for the call,
        # so no revolving-buffer machinery / per-step pipeline overhead.
        return pl.pallas_call(
            kernel,
            out_shape=jax.ShapeDtypeStruct((b_sz, n_total), jnp.float32),
            in_specs=[
                pl.BlockSpec(memory_space=pltpu.MemorySpace.VMEM),  # x
                pl.BlockSpec(memory_space=pltpu.MemorySpace.VMEM),  # fused params
            ],
            out_specs=pl.BlockSpec(memory_space=pltpu.MemorySpace.VMEM),
            cost_estimate=cost,
        )(x, params)

    fwd = jax.jit(_forward)
    return lambda x: fwd(x, params)


def _reference(x, weights, biases):
    outs = [jnp.maximum(x @ weights[i] + biases[i], 0.0)
            for i in range(weights.shape[0])]
    return jnp.concatenate(outs, axis=1)


if __name__ == "__main__":
    key = jax.random.PRNGKey(0)
    kx, kw, kb = jax.random.split(key, 3)

    x = jax.random.normal(kx, (B, D_IN), dtype=jnp.float32)
    # Deterministic "parameters" for the N_SUB Linear subnetworks.
    weights = jax.random.normal(kw, (N_SUB, D_IN, D_OUT), dtype=jnp.float32) * 0.1
    biases = jax.random.normal(kb, (N_SUB, D_OUT), dtype=jnp.float32) * 0.1

    forward = make_multimodular_forward(weights, biases)   # params fused once
    out = jax.block_until_ready(forward(x))

    ref = _reference(x, weights, biases)
    assert out.shape == (B, N_TOTAL), out.shape
    assert jnp.allclose(out, ref, atol=1e-5, rtol=1e-5), \
        float(jnp.max(jnp.abs(out - ref)))

    print("KERNEL_OK")
</pallas_src>

<mosaic_0001>
module attributes {stable_mosaic.version = 11 : i64} {
  func.func @_fused_kernel(%arg0: memref<8x32xf32, #tpu.memory_space<vmem>>, %arg1: memref<40x384xf32, #tpu.memory_space<vmem>>, %arg2: memref<8x384xf32, #tpu.memory_space<vmem>>) attributes {dimension_semantics = [], scalar_prefetch = 0 : i64, scratch_operands = 0 : i64, tpu.core_type = #tpu.core_type<tc>} {
    %c0 = arith.constant 0 : index
    %c0_0 = arith.constant 0 : index
    %0 = vector.load %arg1[%c0, %c0_0] : memref<40x384xf32, #tpu.memory_space<vmem>>, vector<32x384xf32>
    %c32 = arith.constant 32 : index
    %c0_1 = arith.constant 0 : index
    %1 = vector.load %arg1[%c32, %c0_1] : memref<40x384xf32, #tpu.memory_space<vmem>>, vector<1x384xf32>
    %c0_2 = arith.constant 0 : index
    %c0_3 = arith.constant 0 : index
    %2 = vector.load %arg0[%c0_2, %c0_3] : memref<8x32xf32, #tpu.memory_space<vmem>>, vector<8x32xf32>
    %cst = arith.constant dense<0.000000e+00> : vector<8x384xf32>
    %3 = tpu.matmul %2, %0, %cst {dimension_numbers = #tpu.dot_dimension_numbers<[1], [0], [0], [1], [0, 0, 1, 1], [], []>} : vector<8x32xf32>, vector<32x384xf32>, vector<8x384xf32> -> vector<8x384xf32>
    %4 = vector.broadcast %1 : vector<1x384xf32> to vector<8x384xf32>
    %5 = arith.addf %3, %4 : vector<8x384xf32>
    %cst_4 = arith.constant 0.000000e+00 : f32
    %6 = vector.broadcast %cst_4 : f32 to vector<8x384xf32>
    %7 = arith.maximumf %5, %6 : vector<8x384xf32>
    %c0_5 = arith.constant 0 : index
    %c0_6 = arith.constant 0 : index
    %8 = vector.load %arg2[%c0_5, %c0_6] : memref<8x384xf32, #tpu.memory_space<vmem>>, vector<8x384xf32>
    tpu.vector_store %arg2[%c0_5, %c0_6], %7 {strides = array<i32>} : memref<8x384xf32, #tpu.memory_space<vmem>>, vector<8x384xf32>,
    return
  }
}

</mosaic_0001>

<bundles_post_ra>
// kernel: _forward.1
= control target key start
LH: loop header
LB: loop body
LE: loop exit
PB: predicated region body
PF: predicated region fallthrough
CT: control target
= control target key end

     0   :  { %7 = vsyncpa [#allocation3], 0  ;;  %s267_s0 = inlined_call_operand.hbm [shape: f32[8,32], index: 0, kind: input, shape index: {}]   ;;  %s268_s1 = inlined_call_operand.hbm [shape: f32[40,384], index: 1, kind: input, shape index: {}]   ;;  %s269_s2 = inlined_call_operand.hbm [shape: f32[8,384], index: 2, kind: output, shape index: {}]  }
   0x1   :  { %8 = vsyncpa [#allocation6], 0 }
   0x2   :  { %9 = vsyncpa [#allocation4], 0  ;;  %s15_s11 = sshll.u32 %s267_s0, 4  ;;  %s238_s12 = smov [#allocation2]   ;;  %s16_s11 = int_to_ptr.hbm [resolvable:$true] %s15_s11 }
   0x3   :  { %s17_s13 = sshll.u32 %s238_s12, 4  ;;  %s25_s16 = sshll.u32 %s268_s1, 4  ;;  %s18_s13 = int_to_ptr.vmem [resolvable:$true] %s17_s13  ;;  %s26_s16 = int_to_ptr.hbm [resolvable:$true] %s25_s16 }
   0x4   :  { %20 = dma.hbm_to_vmem [thread:$0]  %s16_s11, 128, %s18_s13, [#allocation3]  }
   0x5   :  { %s239_s17 = smov [#allocation5]   ;;  %s240_s19 = smov 384  }
   0x6   :  { %s27_s18 = sshll.u32 %s239_s17, 4  ;;  %s241_s20 = smov 24   ;;  %s28_s18 = int_to_ptr.vmem [resolvable:$true] %s27_s18 }
   0x7   :  { %33 = dma.hbm_to_vmem [thread:$0]  %s26_s16, 1920, %s28_s18, [#allocation6], %s240_s19, %s240_s19, %s241_s20  }
   0x8   :  { %232 = dma.done.wait [#allocation3], 128  }
   0x9   :  { %233 = vsyncadd [#allocation3], 4294967168 }
   0xa   :  { %234 = dma.done.wait [#allocation6], 1920  }
   0xb   :  { %235 = vsyncadd [#allocation6], 4294965376  ;;  %v53_v0 = vld [vmem:[#allocation5 + $0x58] sm:$0xff]  ;;  %v50_v1 = vld [vmem:[#allocation5 + $0x40] sm:$0xff]  ;;  %vm64_vm0 = vcmask 261120   ;;  %s242_s0 = smov [#allocation7]  }
   0xc   :  { %120 = vmatpush.msra.mxu2 %v53_v0  ;;  %v51_v2 = vld [vmem:[#allocation5 + $0x48] sm:$0xff]  ;;  %v52_v3 = vld [vmem:[#allocation5 + $0x50] sm:$0xff]  ;;  %v49_v6 = vld [vmem:[#allocation5 + $0x38] sm:$0xff]  ;;  %s139_s1 = sshll.u32 %s242_s0, 4  ;;  %s141_s23 = sshll.u32 %s269_s2, 4  ;;  %s140_s1 = int_to_ptr.vmem [resolvable:$true] %s139_s1  ;;  %s142_s23 = int_to_ptr.hbm [resolvable:$true] %s141_s23 }
   0xd   :  { %v47_v4 = vld [vmem:[#allocation5 + $0x28] sm:$0xff]  ;;  %80 = vmatpush.msra.mxu0 %v51_v2  ;;  %100 = vmatpush.msra.mxu1 %v52_v3  ;;  %v48_v5 = vld [vmem:[#allocation5 + $0x30] sm:$0xff]  ;;  %v45_v7 = vld [vmem:[#allocation5 + $0x18] sm:$0xff] }
   0xe   :  { %121 = vmatpush.msra.mxu2 %v50_v1  ;;  %v46_v8 = vld [vmem:[#allocation5 + $0x20] sm:$0xff]  ;;  %v44_v9 = vld [vmem:[#allocation5 + $0x10] sm:$0xff]  ;;  %v56_v10 = vld [vmem:[#allocation2] sm:$0xff] }
   0xf   :  { %81 = vmatpush.msra.mxu0 %v48_v5  ;;  %101 = vmatpush.msra.mxu1 %v49_v6  ;;  %v42_v11 = vld [vmem:[#allocation5] sm:$0xff]  ;;  %v43_v12 = vld [vmem:[#allocation5 + $0x8] sm:$0xff] }
  0x10   :  { %122 = vmatpush.msra.mxu2 %v47_v4  ;;  %v55_v13 = vld [vmem:[#allocation5 + $0x60] ss:$8 sm:$0x7] }
  0x11   :  { %82 = vmatpush.msra.mxu0 %v45_v7  ;;  %102 = vmatpush.msra.mxu1 %v46_v8  ;;  %v58_v14 = vperm.slane %v55_v13, 0  ;;  %v59_v15 = vperm.slane %v55_v13, 1  ;;  %v60_v20 = vperm.slane %v55_v13, 2 }
  0x12   :  { %123 = vmatpush.msra.mxu2 %v44_v9 }
  0x13   :  { %154 = vmatmul.msk.f32.vlgmr.msra.gmra.mxu2 %vm64_vm0, %v56_v10  ;;  %83 = vmatpush.msra.mxu0 %v42_v11 }
  0x14   :  { %103 = vmatpush.msra.mxu1 %v43_v12  ;;  %152 = vmatmul.msk.f32.vlgmr.msra.gmra.mxu0 %vm64_vm0, %v56_v10 }
  0x15   :  { %153 = vmatmul.msk.f32.vlgmr.msra.gmra.mxu1 %vm64_vm0, %v56_v10 }
  0x91   :  { %v85_v16 = vpop.f32.mrf.mxu0 }
  0x92   :  { %v86_v17 = vadd.f32 %v85_v16, %v58_v14  ;;  %v105_v18 = vpop.f32.mrf.mxu1 }
  0x93   :  { %v106_v19 = vadd.f32 %v105_v18, %v59_v15 }
  0x94   :  { %v128_v21 = vmax.f32 %v86_v17, 0.0 }
  0x95   :  { %v129_v22 = vmax.f32 %v106_v19, 0.0 }
  0x96   :  { %131 = vst [vmem:[#allocation7] sm:$0xff] %v128_v21  ;;  %v125_v23 = vpop.f32.mrf.mxu2 }
  0x97   :  { %132 = vst [vmem:[#allocation7 + $0x8] sm:$0xff] %v129_v22  ;;  %v126_v24 = vadd.f32 %v125_v23, %v60_v20 }
  0x99   :  { %v130_v25 = vmax.f32 %v126_v24, 0.0 }
  0x9b   :  { %133 = vst [vmem:[#allocation7 + $0x10] sm:$0xff] %v130_v25 }
  0x9c   :  { %144 = dma.vmem_to_hbm [thread:$0]  %s140_s1, 384, %s142_s23, [#allocation4]  }
  0x9d   :  { %236 = dma.done.wait [#allocation4], 384  }
  0x9e   :  { %237 = vsyncadd [#allocation4], 4294966912 }
  0x9f   :  { %149 = vsyncpa [#allocation3], 1 }
  0xa0   :  { %150 = vsyncpa [#allocation6], 1 }
  0xa1   :  { %151 = vsyncpa [#allocation4], 1 }

</bundles_post_ra>
